<compile_context>
chip_gen: v6e
topology: v6e:2x2x1
jax: 0.10.0
libtpu: 0.0.40
codegen_flags: <defaults>
</compile_context>

<pallas_src>
import functools

import jax
import jax.numpy as jnp
from jax.experimental import pallas as pl
from jax.experimental.pallas import tpu as pltpu


def _proden_kernel(logits_ref, target_ref, loss_part_ref, new_target_ref, *,
                   tile_b, batch, assume_row_normalized, mask_rows):
    """Per batch-tile:
         loss partial = sum_rows( sum(target*shifted) - sum(target)*log(sum_exp) )
         new_target   = normalize_rows( where(target>0, exp(shifted), 0) )
    """
    logits = logits_ref[...].astype(jnp.float32)          # [TB, C]
    target = target_ref[...].astype(jnp.float32)          # [TB, C]

    # Max-shifted exp along the class (lane) axis.
    m = jnp.max(logits, axis=1, keepdims=True)             # [TB, 1]
    shifted = logits - m
    e = jnp.exp(shifted)                                    # EUP
    s = jnp.sum(e, axis=1, keepdims=True)                   # XLU row reduce

    # Loss partial without materializing log_probs:
    #   sum_c target * (shifted - log s) = sum(target*shifted) - sum(target)*log(s)
    # (If user logits contain a true -inf at a zero-target class, 0*(-inf)=NaN
    #  here — but the PyTorch reference also produces NaN there, so semantics
    #  match.)
    t_shift = jnp.sum(target * shifted, axis=1, keepdims=True)   # [TB, 1]
    if assume_row_normalized:
        per_row = t_shift - jnp.log(s)                            # drops one XLU reduce
    else:
        t_sum = jnp.sum(target, axis=1, keepdims=True)            # [TB, 1]
        per_row = t_shift - t_sum * jnp.log(s)

    if mask_rows:
        # Partial last tile: rows >= batch hold stale data; zero their loss
        # contribution (the where also squashes any NaN from garbage rows).
        row = (pl.program_id(0) * tile_b
               + jax.lax.broadcasted_iota(jnp.int32, per_row.shape, 0))
        per_row = jnp.where(row < batch, per_row, jnp.float32(0.0))

    tile_sum = jnp.sum(per_row)                                   # scalar
    loss_part_ref[...] = jnp.full(loss_part_ref.shape, tile_sum, jnp.float32)

    # Confidence update: the 1/s of softmax cancels against the row
    # renormalization, so work directly with the masked exponentials.
    masked_e = jnp.where(target > 0, e, jnp.float32(0.0))         # [TB, C]
    row_sum = jnp.sum(masked_e, axis=1, keepdims=True)            # [TB, 1]
    # Clamp: degenerate / out-of-range rows can't produce 0/0 = NaN.
    row_sum = jnp.maximum(row_sum, jnp.float32(1e-30))
    inv = pl.reciprocal(row_sum, approx=True)                     # EUP slot (cheap)
    inv = inv * (jnp.float32(2.0) - row_sum * inv)                # one Newton step
    new_target_ref[...] = (masked_e * inv).astype(new_target_ref.dtype)


def proden_forward_pallas(logits, target, *, tile_b=1024,
                          assume_row_normalized=False):
    """logits: [B, C], target: [B, C] (gathered confidence rows).
    Returns (scalar loss, new_target [B, C])."""
    B, C = logits.shape

    # Generation-aware VMEM budget (v5e/v6e: 128 MiB physical -> 64 MiB cap;
    # v7x: 64 MiB physical -> 48 MiB cap).  Explicit limit also lifts v5e's
    # 16 MiB scoped default.
    try:
        vmem_cap = int(pltpu.get_tpu_info().vmem_capacity_bytes)
    except Exception:  # pragma: no cover - e.g. interpret mode / no TPU info
        vmem_cap = 64 * 1024 * 1024
    vmem_limit = int(min(vmem_cap * 3 // 4, 64 * 1024 * 1024))

    # ~6 live buffers (2 inputs + 1 output, double-buffered) of TB x C f32;
    # keep the working set under half the scoped limit for headroom.
    max_tb_budget = max(8, (vmem_limit // 2) // (6 * C * 4))

    if B <= 8:
        TB = B                                # block == full batch dim (legal)
    else:
        TB = min(tile_b, max_tb_budget, (B // 8) * 8)   # clamp to real batch
        if B >= 16:
            # >= 2 tiles so the "parallel" axis spans both v7x TensorCores.
            half = ((-(-B // 2)) + 7) // 8 * 8
            TB = min(TB, half)
        TB = max(8, (TB // 8) * 8)

    num_tiles = -(-B // TB)
    mask_rows = (B % TB) != 0

    kernel = functools.partial(
        _proden_kernel, tile_b=TB, batch=B,
        assume_row_normalized=assume_row_normalized, mask_rows=mask_rows)

    loss_parts, new_target = pl.pallas_call(
        kernel,
        grid=(num_tiles,),
        in_specs=[
            pl.BlockSpec((TB, C), lambda i: (i, 0)),
            pl.BlockSpec((TB, C), lambda i: (i, 0)),
        ],
        out_specs=(
            pl.BlockSpec((1, 8, 128), lambda i: (i, 0, 0)),   # lane-dense partials
            pl.BlockSpec((TB, C), lambda i: (i, 0)),
        ),
        out_shape=(
            jax.ShapeDtypeStruct((num_tiles, 8, 128), jnp.float32),
            jax.ShapeDtypeStruct((B, C), target.dtype),
        ),
        compiler_params=pltpu.CompilerParams(
            dimension_semantics=("parallel",),   # shard tiles across TCs (v7x)
            vmem_limit_bytes=vmem_limit,
        ),
    )(logits, target)

    loss = -jnp.sum(loss_parts[:, 0, 0]) / B
    return loss, new_target


class ProdenLoss:
    """JAX/Pallas port of Proden_loss. `confidence` is held as a JAX array
    and functionally updated in place of the PyTorch buffer mutation."""

    def __init__(self, target):
        self.confidence = jnp.asarray(target)                       # [N, C]

    def forward(self, output1, index, update_target=True):
        output1 = jnp.asarray(output1)
        target = self.confidence[index, :]                          # gather (glue)
        loss, new_target = proden_forward_pallas(output1, target)
        if update_target:
            # scatter-back of the detached revised confidences (glue)
            self.confidence = self.confidence.at[index, :].set(new_target)
        return loss


def _reference(output1, confidence, index):
    """Pure-JAX reference matching the PyTorch forward exactly."""
    probs = jax.nn.softmax(output1, axis=1)
    target = confidence[index, :]
    l = target * jnp.log(probs)
    loss = -jnp.sum(l) / l.shape[0]
    revised = jnp.where(target > 0, 1.0, 0.0) * probs
    revised = revised / jnp.sum(revised, axis=1, keepdims=True)
    new_conf = confidence.at[index, :].set(revised)
    return loss, new_conf


if __name__ == "__main__":
    key = jax.random.PRNGKey(0)
    k1, k2 = jax.random.split(key)

    N, B, C = 32, 8, 16  # dataset size, batch size, num classes

    # Deterministic synthetic partial-label confidence table: each row has a
    # random support set of candidate labels, uniformly weighted.
    cand = (jax.random.uniform(k1, (N, C)) < 0.4).astype(jnp.float32)
    cand = cand.at[:, 0].set(1.0)  # ensure non-empty candidate set per row
    confidence = cand / jnp.sum(cand, axis=1, keepdims=True)

    logits = jax.random.normal(k2, (B, C), dtype=jnp.float32)
    index = jnp.arange(B, dtype=jnp.int32) * 3 % N

    module = ProdenLoss(confidence)
    loss = module.forward(logits, index, update_target=True)
    loss = jax.block_until_ready(loss)
    new_conf = jax.block_until_ready(module.confidence)

    ref_loss, ref_conf = _reference(logits, confidence, index)
    assert jnp.allclose(loss, ref_loss, rtol=1e-5, atol=1e-5), (loss, ref_loss)
    assert jnp.allclose(new_conf, ref_conf, rtol=1e-5, atol=1e-5)

    print("KERNEL_OK")
</pallas_src>

<mosaic_0001>
module attributes {stable_mosaic.version = 11 : i64} {
  func.func @_proden_kernel(%arg0: i32, %arg1: memref<8x16xf32, #tpu.memory_space<vmem>>, %arg2: memref<8x16xf32, #tpu.memory_space<vmem>>, %arg3: memref<1x8x128xf32, #tpu.memory_space<vmem>>, %arg4: memref<8x16xf32, #tpu.memory_space<vmem>>) attributes {dimension_semantics = [#tpu.dimension_semantics<parallel>], iteration_bounds = array<i64: 1>, scalar_prefetch = 0 : i64, scratch_operands = 0 : i64, tpu.core_type = #tpu.core_type<tc>, window_params = [{transform_indices = @transform_0, window_bounds = array<i64: 8, 16>}, {transform_indices = @transform_1, window_bounds = array<i64: 8, 16>}, {transform_indices = @transform_2, window_bounds = array<i64: 1, 8, 128>}, {transform_indices = @transform_3, window_bounds = array<i64: 8, 16>}]} {
    %c0 = arith.constant 0 : index
    %c0_0 = arith.constant 0 : index
    %0 = vector.load %arg1[%c0, %c0_0] : memref<8x16xf32, #tpu.memory_space<vmem>>, vector<8x16xf32>
    %c0_1 = arith.constant 0 : index
    %c0_2 = arith.constant 0 : index
    %1 = vector.load %arg2[%c0_1, %c0_2] : memref<8x16xf32, #tpu.memory_space<vmem>>, vector<8x16xf32>
    %cst = arith.constant dense<0xFF800000> : vector<8xf32>
    %2 = vector.multi_reduction <maximumf>, %0, %cst [1] : vector<8x16xf32> to vector<8xf32>
    %3 = vector.shape_cast %2 : vector<8xf32> to vector<8x1xf32>
    %4 = vector.broadcast %3 : vector<8x1xf32> to vector<8x16xf32>
    %5 = arith.subf %0, %4 : vector<8x16xf32>
    %6 = math.exp %5 : vector<8x16xf32>
    %cst_3 = arith.constant dense<0.000000e+00> : vector<8xf32>
    %7 = vector.multi_reduction <add>, %6, %cst_3 [1] : vector<8x16xf32> to vector<8xf32>
    %8 = vector.shape_cast %7 : vector<8xf32> to vector<8x1xf32>
    %9 = arith.mulf %1, %5 : vector<8x16xf32>
    %cst_4 = arith.constant dense<0.000000e+00> : vector<8xf32>
    %10 = vector.multi_reduction <add>, %9, %cst_4 [1] : vector<8x16xf32> to vector<8xf32>
    %11 = vector.shape_cast %10 : vector<8xf32> to vector<8x1xf32>
    %cst_5 = arith.constant dense<0.000000e+00> : vector<8xf32>
    %12 = vector.multi_reduction <add>, %1, %cst_5 [1] : vector<8x16xf32> to vector<8xf32>
    %13 = vector.shape_cast %12 : vector<8xf32> to vector<8x1xf32>
    %14 = math.log %8 : vector<8x1xf32>
    %15 = arith.mulf %13, %14 : vector<8x1xf32>
    %16 = arith.subf %11, %15 : vector<8x1xf32>
    %17 = vector.shape_cast %16 : vector<8x1xf32> to vector<1x8x1xf32>
    %cst_6 = arith.constant dense<0.000000e+00> : vector<1xf32>
    %18 = vector.multi_reduction <add>, %17, %cst_6 [1, 2] : vector<1x8x1xf32> to vector<1xf32>
    %19 = vector.shape_cast %18 : vector<1xf32> to vector<1x1x1xf32>
    %20 = vector.extract %19[0, 0, 0] : f32 from vector<1x1x1xf32>
    %21 = vector.broadcast %20 : f32 to vector<1x8x128xf32>
    %c0_7 = arith.constant 0 : index
    %c0_8 = arith.constant 0 : index
    %c0_9 = arith.constant 0 : index
    %22 = vector.load %arg3[%c0_7, %c0_8, %c0_9] : memref<1x8x128xf32, #tpu.memory_space<vmem>>, vector<1x8x128xf32>
    tpu.vector_store %arg3[%c0_7, %c0_8, %c0_9], %21 {strides = array<i32>} : memref<1x8x128xf32, #tpu.memory_space<vmem>>, vector<1x8x128xf32>,
    %cst_10 = arith.constant 0.000000e+00 : f32
    %23 = vector.broadcast %cst_10 : f32 to vector<8x16xf32>
    %24 = arith.cmpf ogt, %1, %23 : vector<8x16xf32>
    %cst_11 = arith.constant 0.000000e+00 : f32
    %25 = vector.broadcast %cst_11 : f32 to vector<8x16xf32>
    %26 = arith.select %24, %6, %25 : vector<8x16xi1>, vector<8x16xf32>
    %cst_12 = arith.constant dense<0.000000e+00> : vector<8xf32>
    %27 = vector.multi_reduction <add>, %26, %cst_12 [1] : vector<8x16xf32> to vector<8xf32>
    %28 = vector.shape_cast %27 : vector<8xf32> to vector<8x1xf32>
    %cst_13 = arith.constant 1.000000e-30 : f32
    %29 = vector.broadcast %cst_13 : f32 to vector<8x1xf32>
    %30 = arith.maximumf %28, %29 : vector<8x1xf32>
    %31 = tpu.reciprocal %30 {approx = true} : vector<8x1xf32> -> vector<8x1xf32>
    %32 = arith.mulf %30, %31 : vector<8x1xf32>
    %cst_14 = arith.constant 2.000000e+00 : f32
    %33 = vector.broadcast %cst_14 : f32 to vector<8x1xf32>
    %34 = arith.subf %33, %32 : vector<8x1xf32>
    %35 = arith.mulf %31, %34 : vector<8x1xf32>
    %36 = vector.broadcast %35 : vector<8x1xf32> to vector<8x16xf32>
    %37 = arith.mulf %26, %36 : vector<8x16xf32>
    %c0_15 = arith.constant 0 : index
    %c0_16 = arith.constant 0 : index
    %38 = vector.load %arg4[%c0_15, %c0_16] : memref<8x16xf32, #tpu.memory_space<vmem>>, vector<8x16xf32>
    tpu.vector_store %arg4[%c0_15, %c0_16], %37 {strides = array<i32>} : memref<8x16xf32, #tpu.memory_space<vmem>>, vector<8x16xf32>,
    return
  }
  func.func @transform_0(%arg0: i32) -> (i32, i32) {
    %c0_i32 = arith.constant 0 : i32
    %c0_i32_0 = arith.constant 0 : i32
    return %arg0, %c0_i32 : i32, i32
  }
  func.func @transform_1(%arg0: i32) -> (i32, i32) {
    %c0_i32 = arith.constant 0 : i32
    %c0_i32_0 = arith.constant 0 : i32
    return %arg0, %c0_i32 : i32, i32
  }
  func.func @transform_2(%arg0: i32) -> (i32, i32, i32) {
    %c0_i32 = arith.constant 0 : i32
    %c0_i32_0 = arith.constant 0 : i32
    %c0_i32_1 = arith.constant 0 : i32
    return %arg0, %c0_i32, %c0_i32_0 : i32, i32, i32
  }
  func.func @transform_3(%arg0: i32) -> (i32, i32) {
    %c0_i32 = arith.constant 0 : i32
    %c0_i32_0 = arith.constant 0 : i32
    return %arg0, %c0_i32 : i32, i32
  }
}

</mosaic_0001>

<bundles_post_ra>
// kernel: tpu_custom_call.1
= control target key start
LH: loop header
LB: loop body
LE: loop exit
PB: predicated region body
PF: predicated region fallthrough
CT: control target
= control target key end

     0   :  { %9 = vsyncpa [#allocation3], 0  ;;  %s259_s0 = inlined_call_operand.hbm [shape: f32[8,16], index: 0, kind: input, shape index: {}]   ;;  %s260_s1 = inlined_call_operand.hbm [shape: f32[8,16], index: 1, kind: input, shape index: {}]   ;;  %s261_s2 = inlined_call_operand.hbm [shape: f32[1,8,128], index: 2, kind: output, shape index: {0}]   ;;  %s262_s3 = inlined_call_operand.hbm [shape: f32[8,16], index: 3, kind: output, shape index: {1}]  }
   0x1   :  { %10 = vsyncpa [#allocation6], 0 }
   0x2   :  { %11 = vsyncpa [#allocation4], 0 }
   0x3   :  { %12 = vsyncpa [#allocation9], 0  ;;  %s217_s12 = smov [#allocation2]   ;;  %s218_s14 = smov [#allocation5]  }
   0x4   :  { %s19_s13 = sshll.u32 %s217_s12, 4  ;;  %s29_s15 = sshll.u32 %s218_s14, 4  ;;  %s20_s13 = int_to_ptr.vmem [resolvable:$true] %s19_s13  ;;  %s30_s15 = int_to_ptr.vmem [resolvable:$true] %s29_s15 }
   0x5   :  { %s137_s16 = scalar_lea.vmem %s20_s13, 128  ;;  %p142_p1 = scmp.lt.s32.totalorder %s20_s13, %s20_s13 }
   0x6   :  { %p138_p0 = scmp.ne.s32.totalorder %s20_s13, %s137_s16  ;;  %p143_p2 = scmp.lt.s32.totalorder %s137_s16, %s137_s16 }
   0x8   :  { %p144_p3 = por %p143_p2, %p142_p1 }
   0xa   :  { %p145_p4 = pnand %p144_p3, %p138_p0 }
   0xc   :  { %148 = shalt.err (!%p145_p4)
}
   0xd   :  { %22 = dma.hbm_to_vmem [thread:$0]  %s259_s0, 128, %s20_s13, [#allocation3]  }
   0xe   :  { %s157_s19 = scalar_lea.vmem %s30_s15, 128  ;;  %p162_p6 = scmp.lt.s32.totalorder %s30_s15, %s30_s15 }
   0xf   :  { %p158_p5 = scmp.ne.s32.totalorder %s30_s15, %s157_s19  ;;  %p163_p7 = scmp.lt.s32.totalorder %s157_s19, %s157_s19 }
  0x11   :  { %p164_p8 = por %p163_p7, %p162_p6 }
  0x13   :  { %p165_p9 = pnand %p164_p8, %p158_p5 }
  0x15   :  { %168 = shalt.err (!%p165_p9)
}
  0x16   :  { %32 = dma.hbm_to_vmem [thread:$0]  %s260_s1, 128, %s30_s15, [#allocation6]  }
  0x17   :  { %209 = dma.done.wait [#allocation3], 128  }
  0x18   :  { %210 = vsyncadd [#allocation3], 4294967168 }
  0x19   :  { %211 = dma.done.wait [#allocation6], 128  }
  0x1a   :  { %212 = vsyncadd [#allocation6], 4294967168  ;;  %vm41_vm0 = vcmask 130048   ;;  %v39_v0 = vld [vmem:[#allocation2] sm:$0xff]  ;;  %v40_v2 = vld [vmem:[#allocation5] sm:$0xff]  ;;  %vm62_vm2 = vcmask 7168  }
  0x1b   :  { %v42_v1 = vsel %vm41_vm0, %v39_v0, -inf  ;;  %v55_v3 = vsel %vm41_vm0, %v40_v2, 0.0  ;;  %vm75_vm1 = vcmp.gt.f32.partialorder %v40_v2, 0.0  ;;  %s219_s0 = smov [#allocation8]  }
  0x1c   :  { %43 = vmax.xlane.f32.xlu0 %v42_v1  ;;  %56 = vadd.xlane.f32.xlu1 %v55_v3  ;;  %s103_s1 = sshll.u32 %s219_s0, 4  ;;  %s104_s1 = int_to_ptr.vmem [resolvable:$true] %s103_s1 }
  0x1d   :  { %s169_s22 = scalar_lea.vmem %s104_s1, 128  ;;  %p174_p11 = scmp.lt.s32.totalorder %s104_s1, %s104_s1 }
  0x1e   :  { %p170_p10 = scmp.ne.s32.totalorder %s104_s1, %s169_s22  ;;  %p175_p12 = scmp.lt.s32.totalorder %s169_s22, %s169_s22 }
  0x20   :  { %p176_p13 = por %p175_p12, %p174_p11 }
  0x22   :  { %p177_p0 = pnand %p176_p13, %p170_p10 }
  0xa5   :  { %v44_v4 = vpop.xlane.xlu0 %43  ;;  %v57_v13 = vpop.xlane.xlu1 %56 }
  0xa6   :  { %v45_v5 = vsub.f32 %v39_v0, %v44_v4 }
  0xa8   :  { %v46_v6 = vmul.f32 1.442695, %v45_v5  ;;  %v51_v7 = vmul.f32 %v45_v5, %v40_v2 }
  0xaa   :  { %123 = vpow2.f32 %v46_v6  ;;  %v52_v8 = vsel %vm41_vm0, %v51_v7, 0.0 }
  0xab   :  { %53 = vadd.xlane.f32.xlu1 %v52_v8 }
  0xb7   :  { %v124_v9 = vpop.eup %123 }
  0xb8   :  { %v48_v10 = vsel %vm41_vm0, %v124_v9, 0.0  ;;  %v76_v11 = vsel %vm75_vm1, %v124_v9, 0.0 }
  0xb9   :  { %49 = vadd.xlane.f32.xlu0 %v48_v10  ;;  %v77_v12 = vsel %vm41_vm0, %v76_v11, 0.0 }
  0xba   :  { %78 = vadd.xlane.f32.xlu1 %v77_v12 }
 0x134   :  { %v54_v14 = vpop.xlane.xlu1 %53 }
 0x142   :  { %v50_v15 = vpop.xlane.xlu0 %49 }
 0x143   :  { %125 = vlog2.f32 %v50_v15  ;;  %v79_v16 = vpop.xlane.xlu1 %78 }
 0x144   :  { %v80_v17 = vmax.f32 %v79_v16, 1e-30 }
 0x146   :  { %127 = vrcp.f32 %v80_v17 }
 0x150   :  { %v126_v18 = vpop.eup %125 }
 0x151   :  { %v59_v19 = vmul.f32 0.6931472, %v126_v18 }
 0x153   :  { %v128_v20 = vpop.eup %127  ;;  %v60_v21 = vmul.f32 %v59_v19, %v57_v13 }
 0x154   :  { %v82_v22 = vmul.f32 %v128_v20, %v80_v17 }
 0x155   :  { %v61_v23 = vsub.f32 %v54_v14, %v60_v21 }
 0x156   :  { %v83_v24 = vsub.f32 2.0, %v82_v22 }
 0x157   :  { %v63_v25 = vsel %vm62_vm2, %v61_v23, 0.0 }
 0x158   :  { %v84_v26 = vmul.f32 %v128_v20, %v83_v24  ;;  %64 = vadd.xlane.f32.xlu0 %v63_v25 }
 0x15a   :  { %v85_v27 = vmul.f32 %v84_v26, %v76_v11 }
 0x15c   :  { %86 = vst.msk [vmem:[#allocation8] sm:$0xff] %vm41_vm0, %v85_v27 }
 0x15d   :  { %180 = shalt.err (!%p177_p0)
}
 0x15e   :  { %106 = dma.vmem_to_hbm [thread:$0]  %s104_s1, 128, %s262_s3, [#allocation9]  }
 0x15f   :  { %s220_s25 = smov [#allocation7]  }
 0x160   :  { %s93_s26 = sshll.u32 %s220_s25, 4  ;;  %s94_s26 = int_to_ptr.vmem [resolvable:$true] %s93_s26 }
 0x161   :  { %s189_s28 = scalar_lea.vmem %s94_s26, 128  ;;  %p194_p2 = scmp.lt.s32.totalorder %s94_s26, %s94_s26 }
 0x162   :  { %p190_p1 = scmp.ne.s32.totalorder %s94_s26, %s189_s28  ;;  %p195_p3 = scmp.lt.s32.totalorder %s189_s28, %s189_s28 }
 0x164   :  { %p196_p4 = por %p195_p3, %p194_p2 }
 0x166   :  { %p197_p5 = pnand %p196_p4, %p190_p1 }
 0x1e1   :  { %v65_v28 = vpop.xlane.xlu0 %64 }
 0x1e2   :  { %v66_v29 = vrot.slane %v65_v28, 4 }
 0x1e4   :  { %v67_v30 = vadd.f32 %v66_v29, %v65_v28 }
 0x1e6   :  { %v68_v31 = vrot.slane %v67_v30, 2 }
 0x1e8   :  { %v69_v32 = vadd.f32 %v68_v31, %v67_v30 }
 0x1ea   :  { %v70_v33 = vrot.slane %v69_v32, 1 }
 0x1ec   :  { %v71_v34 = vadd.f32 %v70_v33, %v69_v32 }
 0x1ee   :  { %117 = vpush %v71_v34 }
 0x21f   :  { %s118_s27 = spop %117 }
 0x220   :  { %v73_v35 = vstv %s118_s27 }
 0x221   :  { %74 = vst [vmem:[#allocation7] sm:$0xff] %v73_v35 }
 0x222   :  { %200 = shalt.err (!%p197_p5)
}
 0x223   :  { %96 = dma.vmem_to_hbm [thread:$0]  %s94_s26, 128, %s261_s2, [#allocation4]  }
 0x224   :  { %213 = dma.done.wait [#allocation4], 128  }
 0x225   :  { %214 = vsyncadd [#allocation4], 4294967168 }
 0x226   :  { %215 = dma.done.wait [#allocation9], 128  }
 0x227   :  { %216 = vsyncadd [#allocation9], 4294967168 }
 0x228   :  { %113 = vsyncpa [#allocation3], 1 }
 0x229   :  { %114 = vsyncpa [#allocation6], 1 }
 0x22a   :  { %115 = vsyncpa [#allocation4], 1 }
 0x22b   :  { %116 = vsyncpa [#allocation9], 1 }

</bundles_post_ra>
